<compile_context>
chip_gen: v7x
topology: tpu7x:2x2x1
jax: 0.10.0
libtpu: 0.0.40
codegen_flags: <defaults>
</compile_context>

<pallas_src>
import functools

import jax
import jax.numpy as jnp
from jax import lax
from jax.experimental import pallas as pl
from jax.experimental.pallas import tpu as pltpu


def _router_phase1_kernel(x_ref, w_ref, b_ref, masked_ref, denom_ref, *,
                          num_experts):
    """Per token-tile: logits -> softmax -> top-1 mask -> partial expert load.

    x_ref:      (TILE_N, dim)   native dtype
    w_ref:      (E, dim)        native dtype
    b_ref:      (E, 1)          f32
    masked_ref: (E, TILE_N)     f32  (lane-dense output slab)
    denom_ref:  (E, 128)        f32  (per-tile partial per-expert load,
                                      broadcast across lanes)
    """
    # Contract the feature axis of both operands directly -> (E, TILE_N).
    # No in-kernel transpose; native-dtype operands, f32 MXU accumulation.
    logits = lax.dot_general(
        w_ref[...], x_ref[...],
        dimension_numbers=(((1,), (1,)), ((), ())),
        preferred_element_type=jnp.float32,
    ) + b_ref[...].astype(jnp.float32)                       # (E, TILE_N)

    # Softmax over the expert (sublane) axis; divide -> EUP reciprocal.
    m = jnp.max(logits, axis=0, keepdims=True)               # (1, TILE_N)
    e = jnp.exp(logits - m)
    gate = e * pl.reciprocal(jnp.sum(e, axis=0, keepdims=True), approx=True)

    # Top-1 mask straight from the logits (softmax is monotone); first-max
    # tie-break, matching torch.topk(1).
    exp_idx = lax.broadcasted_iota(jnp.int32, logits.shape, 0)
    first_max = jnp.min(
        jnp.where(logits == m, exp_idx, num_experts), axis=0, keepdims=True
    )
    masked = jnp.where(exp_idx == first_max, gate, 0.0)       # (E, TILE_N)

    masked_ref[...] = masked.astype(masked_ref.dtype)

    # Token reduction is a lane-axis sum in this layout.
    partial = jnp.sum(masked, axis=1, keepdims=True)          # (E, 1)
    denom_ref[...] = jnp.broadcast_to(partial, denom_ref.shape)


def _router_phase2_kernel(masked_ref, scale_ref, out_ref):
    """Rescale each masked-gate tile by capacity / (global denom + eps)."""
    out_ref[...] = masked_ref[...] * scale_ref[...]


def _pick_tile(n):
    for t in (2048, 1024, 512, 256, 128):
        if n % t == 0:
            return t
    return n  # small / odd sizes: whole array in one block


def switch_gate_forward(x, w_gate, b_gate, capacity_factor=1.0, epsilon=1e-6,
                        use_aux_loss=False):
    """Pallas implementation of SwitchGate.forward.

    x:       (N, dim)
    w_gate:  (num_experts, dim)   -- nn.Linear weight
    b_gate:  (num_experts,)       -- nn.Linear bias
    Returns (gate_scores (N, num_experts), aux_loss or None)
    """
    n_tokens, dim = x.shape
    num_experts = w_gate.shape[0]
    capacity = int(capacity_factor * n_tokens)

    tile_n = _pick_tile(n_tokens)
    num_tiles = n_tokens // tile_n

    b_col = b_gate.reshape(num_experts, 1).astype(jnp.float32)

    kernel1 = functools.partial(_router_phase1_kernel, num_experts=num_experts)

    flops = 2 * n_tokens * dim * num_experts
    bytes_accessed = int(
        x.size * x.dtype.itemsize
        + w_gate.size * w_gate.dtype.itemsize
        + 2 * n_tokens * num_experts * 4
    )

    # Phase 1: masked gate tiles (lane-dense (E, N)) + per-tile partial loads.
    masked_t, denom_partials = pl.pallas_call(
        kernel1,
        grid=(num_tiles,),
        out_shape=(
            jax.ShapeDtypeStruct((num_experts, n_tokens), jnp.float32),
            jax.ShapeDtypeStruct((num_experts, num_tiles * 128), jnp.float32),
        ),
        in_specs=[
            pl.BlockSpec((tile_n, dim), lambda i: (i, 0)),
            pl.BlockSpec((num_experts, dim), lambda i: (0, 0)),
            pl.BlockSpec((num_experts, 1), lambda i: (0, 0)),
        ],
        out_specs=(
            pl.BlockSpec((num_experts, tile_n), lambda i: (0, i)),
            pl.BlockSpec((num_experts, 128), lambda i: (0, i)),
        ),
        compiler_params=pltpu.CompilerParams(
            dimension_semantics=("parallel",)),
        cost_estimate=pl.CostEstimate(
            flops=flops,
            transcendentals=n_tokens * num_experts,
            bytes_accessed=bytes_accessed),
    )(x, w_gate, b_col)

    # Combine the tiny per-tile partials; add epsilon exactly ONCE, globally.
    denom = denom_partials.reshape(num_experts, num_tiles, 128)[:, :, 0].sum(1)
    scale = (jnp.float32(capacity) /
             (denom + jnp.float32(epsilon))).reshape(num_experts, 1)

    # Phase 2: rescale the masked gate tiles (still lane-dense, parallel).
    gate_t = pl.pallas_call(
        _router_phase2_kernel,
        grid=(num_tiles,),
        out_shape=jax.ShapeDtypeStruct((num_experts, n_tokens), jnp.float32),
        in_specs=[
            pl.BlockSpec((num_experts, tile_n), lambda i: (0, i)),
            pl.BlockSpec((num_experts, 1), lambda i: (0, 0)),
        ],
        out_specs=pl.BlockSpec((num_experts, tile_n), lambda i: (0, i)),
        compiler_params=pltpu.CompilerParams(
            dimension_semantics=("parallel",)),
    )(masked_t, scale)

    gate_scores = gate_t.T  # (N, E) — relayout once in the wrapper

    if use_aux_loss:
        load = gate_scores.sum(0)        # (E,)
        importance = gate_scores.sum(1)  # (N,)
        # TODO(synk): mirrors the PyTorch shape bug ((E,) vs (N,)); only
        # well-defined when num_experts == n_tokens.
        loss = jnp.mean((load - importance) ** 2)
        return gate_scores, loss
    return gate_scores, None


def _reference(x, w_gate, b_gate, capacity_factor=1.0, epsilon=1e-6):
    """Pure-JAX reference for correctness checking."""
    n_tokens = x.shape[0]
    capacity = int(capacity_factor * n_tokens)
    logits = x.astype(jnp.float32) @ w_gate.astype(jnp.float32).T + b_gate
    gate = jax.nn.softmax(logits, axis=-1)
    top_idx = jnp.argmax(gate, axis=-1)
    mask = jax.nn.one_hot(top_idx, gate.shape[-1], dtype=gate.dtype)
    masked = gate * mask
    denom = masked.sum(0, keepdims=True) + epsilon
    return masked / denom * capacity


def _run_case(key, n_tokens, dim, num_experts):
    k_x, k_w, k_b = jax.random.split(key, 3)
    x = jax.random.normal(k_x, (n_tokens, dim), dtype=jnp.float32)
    bound = 1.0 / (dim ** 0.5)
    w_gate = jax.random.uniform(k_w, (num_experts, dim), jnp.float32,
                                minval=-bound, maxval=bound)
    b_gate = jax.random.uniform(k_b, (num_experts,), jnp.float32,
                                minval=-bound, maxval=bound)

    gate_scores, aux = switch_gate_forward(x, w_gate, b_gate,
                                           capacity_factor=1.0,
                                           epsilon=1e-6,
                                           use_aux_loss=False)
    gate_scores = jax.block_until_ready(gate_scores)
    ref = _reference(x, w_gate, b_gate)

    assert gate_scores.shape == (n_tokens, num_experts)
    assert aux is None
    # Tolerance absorbs the approximate EUP reciprocal (~1e-4 relative).
    assert jnp.allclose(gate_scores, ref, rtol=1e-2, atol=1e-2), \
        f"mismatch vs reference for N={n_tokens}, dim={dim}, E={num_experts}"


if __name__ == "__main__":
    key = jax.random.PRNGKey(0)
    k1, k2 = jax.random.split(key)

    # Small shape matching the module's toy usage (whole arrays, grid of 1).
    _run_case(k1, n_tokens=8, dim=32, num_experts=4)
    # Slightly larger shape exercising the token-tiled grid (3 tiles of 128)
    # and the cross-tile denom combine.
    _run_case(k2, n_tokens=384, dim=128, num_experts=8)

    print("KERNEL_OK")
</pallas_src>

<mosaic_0001>
module attributes {stable_mosaic.version = 11 : i64} {
  func.func @_router_phase1_kernel(%arg0: i32, %arg1: memref<8x32xf32, #tpu.memory_space<vmem>>, %arg2: memref<4x32xf32, #tpu.memory_space<vmem>>, %arg3: memref<4x1xf32, #tpu.memory_space<vmem>>, %arg4: memref<4x8xf32, #tpu.memory_space<vmem>>, %arg5: memref<4x128xf32, #tpu.memory_space<vmem>>) attributes {dimension_semantics = [#tpu.dimension_semantics<parallel>], iteration_bounds = array<i64: 1>, scalar_prefetch = 0 : i64, scratch_operands = 0 : i64, tpu.core_type = #tpu.core_type<tc>, window_params = [{transform_indices = @transform_0, window_bounds = array<i64: 8, 32>}, {pipeline_mode = #tpu.pipeline_mode<synchronous>, transform_indices = @transform_1, window_bounds = array<i64: 4, 32>}, {pipeline_mode = #tpu.pipeline_mode<synchronous>, transform_indices = @transform_2, window_bounds = array<i64: 4, 1>}, {transform_indices = @transform_3, window_bounds = array<i64: 4, 8>}, {transform_indices = @transform_4, window_bounds = array<i64: 4, 128>}]} {
    %c0 = arith.constant 0 : index
    %c0_0 = arith.constant 0 : index
    %0 = vector.load %arg2[%c0, %c0_0] : memref<4x32xf32, #tpu.memory_space<vmem>>, vector<4x32xf32>
    %c0_1 = arith.constant 0 : index
    %c0_2 = arith.constant 0 : index
    %1 = vector.load %arg1[%c0_1, %c0_2] : memref<8x32xf32, #tpu.memory_space<vmem>>, vector<8x32xf32>
    %cst = arith.constant dense<0.000000e+00> : vector<4x8xf32>
    %2 = tpu.matmul %0, %1, %cst {dimension_numbers = #tpu.dot_dimension_numbers<[1], [1], [0], [0], [0, 0, 1, 0], [], []>} : vector<4x32xf32>, vector<8x32xf32>, vector<4x8xf32> -> vector<4x8xf32>
    %c0_3 = arith.constant 0 : index
    %c0_4 = arith.constant 0 : index
    %3 = vector.load %arg3[%c0_3, %c0_4] : memref<4x1xf32, #tpu.memory_space<vmem>>, vector<4x1xf32>
    %4 = vector.broadcast %3 : vector<4x1xf32> to vector<4x8xf32>
    %5 = arith.addf %2, %4 : vector<4x8xf32>
    %cst_5 = arith.constant dense<0xFF800000> : vector<8xf32>
    %6 = vector.multi_reduction <maximumf>, %5, %cst_5 [0] : vector<4x8xf32> to vector<8xf32>
    %7 = vector.shape_cast %6 : vector<8xf32> to vector<1x8xf32>
    %8 = vector.broadcast %7 : vector<1x8xf32> to vector<4x8xf32>
    %9 = arith.subf %5, %8 : vector<4x8xf32>
    %10 = math.exp %9 : vector<4x8xf32>
    %cst_6 = arith.constant dense<0.000000e+00> : vector<8xf32>
    %11 = vector.multi_reduction <add>, %10, %cst_6 [0] : vector<4x8xf32> to vector<8xf32>
    %12 = vector.shape_cast %11 : vector<8xf32> to vector<1x8xf32>
    %13 = tpu.reciprocal %12 {approx = true} : vector<1x8xf32> -> vector<1x8xf32>
    %14 = vector.broadcast %13 : vector<1x8xf32> to vector<4x8xf32>
    %15 = arith.mulf %10, %14 : vector<4x8xf32>
    %16 = tpu.iota {dimensions = array<i32: 0>} : vector<4x8xi32>
    %17 = vector.broadcast %7 : vector<1x8xf32> to vector<4x8xf32>
    %18 = arith.cmpf oeq, %5, %17 : vector<4x8xf32>
    %c4_i32 = arith.constant 4 : i32
    %19 = vector.broadcast %c4_i32 : i32 to vector<4x8xi32>
    %20 = arith.select %18, %16, %19 : vector<4x8xi1>, vector<4x8xi32>
    %cst_7 = arith.constant dense<2147483647> : vector<8xi32>
    %21 = vector.multi_reduction <minsi>, %20, %cst_7 [0] : vector<4x8xi32> to vector<8xi32>
    %22 = vector.shape_cast %21 : vector<8xi32> to vector<1x8xi32>
    %23 = vector.broadcast %22 : vector<1x8xi32> to vector<4x8xi32>
    %24 = arith.cmpi eq, %16, %23 : vector<4x8xi32>
    %cst_8 = arith.constant 0.000000e+00 : f32
    %25 = vector.broadcast %cst_8 : f32 to vector<4x8xf32>
    %26 = arith.select %24, %15, %25 : vector<4x8xi1>, vector<4x8xf32>
    %c0_9 = arith.constant 0 : index
    %c0_10 = arith.constant 0 : index
    %27 = vector.load %arg4[%c0_9, %c0_10] : memref<4x8xf32, #tpu.memory_space<vmem>>, vector<4x8xf32>
    tpu.vector_store %arg4[%c0_9, %c0_10], %26 {strides = array<i32>} : memref<4x8xf32, #tpu.memory_space<vmem>>, vector<4x8xf32>,
    %cst_11 = arith.constant dense<0.000000e+00> : vector<4xf32>
    %28 = vector.multi_reduction <add>, %26, %cst_11 [1] : vector<4x8xf32> to vector<4xf32>
    %29 = vector.shape_cast %28 : vector<4xf32> to vector<4x1xf32>
    %30 = vector.shape_cast %29 : vector<4x1xf32> to vector<4x1xf32>
    %31 = vector.broadcast %30 : vector<4x1xf32> to vector<4x128xf32>
    %c0_12 = arith.constant 0 : index
    %c0_13 = arith.constant 0 : index
    %32 = vector.load %arg5[%c0_12, %c0_13] : memref<4x128xf32, #tpu.memory_space<vmem>>, vector<4x128xf32>
    tpu.vector_store %arg5[%c0_12, %c0_13], %31 {strides = array<i32>} : memref<4x128xf32, #tpu.memory_space<vmem>>, vector<4x128xf32>,
    return
  }
  func.func @transform_0(%arg0: i32) -> (i32, i32) {
    %c0_i32 = arith.constant 0 : i32
    %c0_i32_0 = arith.constant 0 : i32
    return %arg0, %c0_i32 : i32, i32
  }
  func.func @transform_1(%arg0: i32) -> (i32, i32) {
    %c0_i32 = arith.constant 0 : i32
    %c0_i32_0 = arith.constant 0 : i32
    %c0_i32_1 = arith.constant 0 : i32
    return %c0_i32, %c0_i32_0 : i32, i32
  }
  func.func @transform_2(%arg0: i32) -> (i32, i32) {
    %c0_i32 = arith.constant 0 : i32
    %c0_i32_0 = arith.constant 0 : i32
    %c0_i32_1 = arith.constant 0 : i32
    return %c0_i32, %c0_i32_0 : i32, i32
  }
  func.func @transform_3(%arg0: i32) -> (i32, i32) {
    %c0_i32 = arith.constant 0 : i32
    %c0_i32_0 = arith.constant 0 : i32
    return %c0_i32, %arg0 : i32, i32
  }
  func.func @transform_4(%arg0: i32) -> (i32, i32) {
    %c0_i32 = arith.constant 0 : i32
    %c0_i32_0 = arith.constant 0 : i32
    return %c0_i32, %arg0 : i32, i32
  }
}

</mosaic_0001>

<bundles_post_ra>
// kernel: tpu_custom_call.1
= control target key start
LH: loop header
LB: loop body
LE: loop exit
PB: predicated region body
PF: predicated region fallthrough
CT: control target
= control target key end

     0   :  { %10 = vsyncpa [#allocation3], 0  ;;  %s355_s0 = inlined_call_operand.hbm [shape: f32[8,32], index: 0, kind: input, shape index: {}]   ;;  %s356_s1 = inlined_call_operand.vmem [shape: f32[4,32], index: 1, kind: input, shape index: {}]   ;;  %s357_s2 = inlined_call_operand.vmem [shape: f32[4,1], index: 2, kind: input, shape index: {}]   ;;  %s358_s3 = inlined_call_operand.hbm [shape: f32[4,8], index: 3, kind: output, shape index: {0}]   ;;  %s359_s4 = inlined_call_operand.hbm [shape: f32[4,128], index: 4, kind: output, shape index: {1}]  }
   0x1   :  { %11 = vsyncpa [#allocation4], 0 }
   0x2   :  { %12 = vsyncpa [#allocation7], 0  ;;  %s277_s15 = smov [#allocation2]   ;;  %s205_s19 = scalar_lea.hbm %s355_s0, 128 }
   0x3   :  { %s19_s16 = sshll.u32 %s277_s15, 4  ;;  %p206_p0 = scmp.ne.s32.totalorder %s355_s0, %s205_s19  ;;  %s20_s16 = int_to_ptr.vmem [resolvable:$true] %s19_s16 }
   0x4   :  { %p209_p1 = scmp.lt.u32.totalorder %s205_s19, %s355_s0 }
   0x6   :  { %p211_p2 = pnand %p209_p1, %p206_p0 }
   0x8   :  { %214 = shalt.err (!%p211_p2)
}
   0x9   :  { %s215_s24 = scalar_lea.vmem %s20_s16, 128  ;;  %p220_p4 = scmp.lt.s32.totalorder %s20_s16, %s20_s16 }
   0xa   :  { %p216_p3 = scmp.ne.s32.totalorder %s20_s16, %s215_s24  ;;  %p221_p5 = scmp.lt.s32.totalorder %s215_s24, %s215_s24 }
   0xc   :  { %p222_p6 = por %p221_p5, %p220_p4 }
   0xe   :  { %p223_p7 = pnand %p222_p6, %p216_p3 }
  0x10   :  { %226 = shalt.err (!%p223_p7)
}
  0x11   :  { %22 = dma.hbm_to_vmem [thread:$0]  %s355_s0, 128, %s20_s16, [#allocation3]  }
  0x12   :  { %271 = dma.done.wait [#allocation3], 128  }
  0x13   :  { %272 = vsyncadd [#allocation3], 4294967168  ;;  %v278_v0 = vmov 0.0   ;;  %vm279_vm0 = vmmov 0   ;;  %v280_v1 = vmov 0   ;;  %vm38_vm1 = vcmask 261120  }
  0x14   :  { %189 = vmatprep.subr.mxu0 %v278_v0  ;;  %191 = vmatprep.mubr.msk.f32.mxu0 %vm279_vm0, %v278_v0  ;;  %v31_v2 = vld [vmem:[#allocation2] sm:$0xff]  ;;  %vm115_vm2 = vcmask 60416   ;;  %v135_v15 = vlaneseq  ;;  %s281_s0 = smov [#allocation5]  }
  0x15   :  { %200 = vset.pattern.permute.xlu0 %v280_v1  ;;  %v32_v3 = vld [vmem:[%s357_s2] sm:$0xf]  ;;  %190 = vmatpush3.xpose.msk.msra.mxu0 %vm38_vm1, %v31_v2 }
  0x16   :  { %v30_v4 = vld [vmem:[%s356_s1] sm:$0xf]  ;;  %35 = vperm.xlu0 %200, %v32_v3   ;;  %v136_v18 = vshrl.u32 %v135_v15, 7  ;;  %s162_s1 = sshll.u32 %s281_s0, 4  ;;  %s163_s1 = int_to_ptr.vmem [resolvable:$true] %s162_s1 }
  0x17   :  { %s227_s2 = scalar_lea.vmem %s163_s1, 64  ;;  %p232_p9 = scmp.lt.s32.totalorder %s163_s1, %s163_s1 }
  0x18   :  { %192 = vmatmul.mubr.msk.f32.vlgmr.msra.gmra.mrb[0].mxu0 %vm38_vm1, %v30_v4  ;;  %p228_p8 = scmp.ne.s32.totalorder %s163_s1, %s227_s2  ;;  %p233_p10 = scmp.lt.s32.totalorder %s227_s2, %s227_s2 }
  0x1a   :  { %p234_p11 = por %p233_p10, %p232_p9 }
  0x1c   :  { %p235_p12 = pnand %p234_p11, %p228_p8 }
  0x95   :  { %v36_v5 = vpop.permute.xlu0 %35 }
  0xeb   :  { %v111_v6 = vpop.f32.mrb[0].mxu0 }
  0xec   :  { %v112_v7 = vadd.f32 %v111_v6, %v36_v5  ;;  %v193_v8 = vpop.f32.mrb[1].mxu0 }
  0xee   :  { %v116_v9 = vsel %vm115_vm2, %v112_v7, -inf }
  0xef   :  { %v117_v10 = vrot.slane %v116_v9, 4 }
  0xf1   :  { %v118_v11 = vmax.f32 %v116_v9, %v117_v10 }
  0xf3   :  { %v119_v12 = vrot.slane %v118_v11, 2 }
  0xf5   :  { %v120_v13 = vmax.f32 %v118_v11, %v119_v12 }
  0xf7   :  { %v121_v14 = vrot.slane %v120_v13, 1 }
  0xf9   :  { %v122_v16 = vmax.f32 %v120_v13, %v121_v14 }
  0xfb   :  { %v123_v17 = vsub.f32 %v112_v7, %v122_v16  ;;  %vm137_vm3 = vcmp.eq.f32.partialorder %v112_v7, %v122_v16 }
  0xfc   :  { %v138_v20 = vsel %vm137_vm3, %v136_v18, 4 }
  0xfd   :  { %v124_v19 = vmul.f32 1.442695, %v123_v17  ;;  %v139_v21 = vsel %vm115_vm2, %v138_v20, 2147483647 }
  0xfe   :  { %v140_v22 = vrot.slane %v139_v21, 4 }
  0xff   :  { %201 = vpow2.f32 %v124_v19 }
 0x100   :  { %vm141_vm4 = vcmp.lt.s32.totalorder %v139_v21, %v140_v22 }
 0x101   :  { %v142_v26 = vsel %vm141_vm4, %v139_v21, %v140_v22 }
 0x102   :  { %v143_v29 = vrot.slane %v142_v26, 2 }
 0x104   :  { %vm144_vm5 = vcmp.lt.s32.totalorder %v142_v26, %v143_v29 }
 0x105   :  { %v145_v33 = vsel %vm144_vm5, %v142_v26, %v143_v29 }
 0x106   :  { %v146_v34 = vrot.slane %v145_v33, 1 }
 0x108   :  { %vm147_vm6 = vcmp.lt.s32.totalorder %v145_v33, %v146_v34 }
 0x109   :  { %v202_v23 = vpop.eup %201  ;;  %v148_v35 = vsel %vm147_vm6, %v145_v33, %v146_v34 }
 0x10a   :  { %v126_v24 = vsel %vm115_vm2, %v202_v23, 0.0  ;;  %vm149_vm7 = vcmp.eq.s32.totalorder %v136_v18, %v148_v35 }
 0x10b   :  { %v127_v25 = vrot.slane %v126_v24, 4 }
 0x10d   :  { %v128_v27 = vadd.f32 %v127_v25, %v126_v24 }
 0x10f   :  { %v129_v28 = vrot.slane %v128_v27, 2 }
 0x111   :  { %v130_v30 = vadd.f32 %v129_v28, %v128_v27 }
 0x113   :  { %v131_v31 = vrot.slane %v130_v30, 1 }
 0x115   :  { %v132_v32 = vadd.f32 %v131_v31, %v130_v30 }
 0x117   :  { %203 = vrcp.f32 %v132_v32 }
 0x121   :  { %v204_v36 = vpop.eup %203 }
 0x122   :  { %v134_v37 = vmul.f32 %v204_v36, %v202_v23 }
 0x124   :  { %v150_v38 = vsel %vm149_vm7, %v134_v37, 0.0 }
 0x125   :  { %v152_v39 = vsel %vm115_vm2, %v150_v38, 0.0  ;;  %151 = vst.msk [vmem:[#allocation5] sm:$0xf] %vm115_vm2, %v150_v38 }
 0x126   :  { %153 = vadd.xlane.f32.xlu0 %v152_v39 }
 0x127   :  { %238 = shalt.err (!%p235_p12)
}
 0x128   :  { %s239_s7 = scalar_lea.hbm %s358_s3, 64 }
 0x129   :  { %p240_p13 = scmp.ne.s32.totalorder %s358_s3, %s239_s7  ;;  %p243_p0 = scmp.lt.u32.totalorder %s239_s7, %s358_s3 }
 0x12b   :  { %p245_p1 = pnand %p243_p0, %p240_p13 }
 0x12d   :  { %248 = shalt.err (!%p245_p1)
}
 0x12e   :  { %165 = dma.vmem_to_hbm [thread:$0]  %s163_s1, 64, %s358_s3, [#allocation4]  }
 0x12f   :  { %s282_s14 = smov [#allocation6]  }
 0x130   :  { %s172_s15 = sshll.u32 %s282_s14, 4  ;;  %s173_s15 = int_to_ptr.vmem [resolvable:$true] %s172_s15 }
 0x131   :  { %s249_s16 = scalar_lea.vmem %s173_s15, 64  ;;  %p254_p3 = scmp.lt.s32.totalorder %s173_s15, %s173_s15 }
 0x132   :  { %p250_p2 = scmp.ne.s32.totalorder %s173_s15, %s249_s16  ;;  %p255_p4 = scmp.lt.s32.totalorder %s249_s16, %s249_s16 }
 0x134   :  { %p256_p5 = por %p255_p4, %p254_p3 }
 0x136   :  { %p257_p6 = pnand %p256_p5, %p250_p2 }
 0x1b3   :  { %v154_v40 = vpop.xlane.xlu0 %153 }
 0x1b4   :  { %155 = vst [vmem:[#allocation6] sm:$0xf] %v154_v40 }
 0x1b5   :  { %260 = shalt.err (!%p257_p6)
}
 0x1b6   :  { %s261_s19 = scalar_lea.hbm %s359_s4, 64 }
 0x1b7   :  { %p262_p7 = scmp.ne.s32.totalorder %s359_s4, %s261_s19  ;;  %p265_p8 = scmp.lt.u32.totalorder %s261_s19, %s359_s4 }
 0x1b9   :  { %p267_p9 = pnand %p265_p8, %p262_p7 }
 0x1bb   :  { %270 = shalt.err (!%p267_p9)
}
 0x1bc   :  { %175 = dma.vmem_to_hbm [thread:$0]  %s173_s15, 64, %s359_s4, [#allocation7]  }
 0x1bd   :  { %273 = dma.done.wait [#allocation4], 64  }
 0x1be   :  { %274 = vsyncadd [#allocation4], 4294967232 }
 0x1bf   :  { %275 = dma.done.wait [#allocation7], 64  }
 0x1c0   :  { %276 = vsyncadd [#allocation7], 4294967232 }
 0x1c1   :  { %182 = vsyncpa [#allocation3], 1 }
 0x1c2   :  { %183 = vsyncpa [#allocation4], 1 }
 0x1c3   :  { %184 = vsyncpa [#allocation7], 1 }

</bundles_post_ra>
